<compile_context>
chip_gen: v5e
topology: v5e:2x2
jax: 0.10.0
libtpu: 0.0.40
codegen_flags: <defaults>
</compile_context>

<pallas_src>
import jax
import jax.numpy as jnp
from jax.experimental import pallas as pl
from jax.experimental.pallas import tpu as pltpu


def _round_up(n, m):
    return ((n + m - 1) // m) * m


def projector_kernel(x1_ref, w1_ref, b1_ref, w2_ref, b2_ref, o_ref):
    # x1_ref: (TB, Cp) f32   already mean-reduced over L, zero-padded C -> Cp
    # w1_ref: (Cp, H)  bf16  fc1 weight (in, out), zero-padded rows
    # b1_ref: (1, H)   f32
    # w2_ref: (H, Cp)  bf16  fc2 weight (in, out), zero-padded cols
    # b2_ref: (1, Cp)  f32   zero-padded
    # o_ref : (TB, Cp)       lane-dense -> unmasked vst
    x1 = x1_ref[...]                                   # f32, kept exact for the residual
    xb = x1.astype(w1_ref.dtype)                       # bf16 LHS for the MXU
    h = jnp.dot(xb, w1_ref[...], preferred_element_type=jnp.float32) + b1_ref[...]
    h = jnp.maximum(h, 0.0)                            # ReLU(fc1), f32
    y = jnp.dot(h.astype(w2_ref.dtype), w2_ref[...],
                preferred_element_type=jnp.float32) + b2_ref[...]
    o_ref[...] = (jnp.maximum(y, 0.0) + x1).astype(o_ref.dtype)   # ReLU(fc2) + residual


def prepare_projector_params(w1, b1, w2, b2, *, compute_dtype=jnp.bfloat16):
    """Hoisted per-parameter prep (pad to lane-dense Cp, cast matmul operands).

    w1: (C, H)   fc1 weight stored (in, out)  == PyTorch fc1.weight.T
    b1: (H,)     w2: (H, C) == fc2.weight.T   b2: (C,)
    """
    C, H = w1.shape
    Cp = _round_up(C, 128)
    return dict(
        w1=jnp.pad(w1.astype(jnp.float32), ((0, Cp - C), (0, 0))).astype(compute_dtype),
        b1=b1.astype(jnp.float32).reshape(1, H),
        w2=jnp.pad(w2.astype(jnp.float32), ((0, 0), (0, Cp - C))).astype(compute_dtype),
        b2=jnp.pad(b2.astype(jnp.float32).reshape(1, C), ((0, 0), (0, Cp - C))),
        C=C, H=H, Cp=Cp,
    )


def projector_forward(x, params, *, tb=256):
    """Projector forward.  x: (B, C, L) (mean over L) or (B, C).  Returns (B, C).

    tb: row tile. 256 matches v6e/v7x MXU; use 128 on v5e. Tiny B collapses to one step.
    """
    C, H, Cp = params["C"], params["H"], params["Cp"]
    out_dtype = x.dtype

    # Mean over L as one XLA reduce outside the kernel (review change #2).
    x1 = jnp.mean(x, axis=-1) if x.ndim == 3 else x
    B = x1.shape[0]

    # Lane-dense columns; rows rounded only to 8 (no full-tile padding copy).
    B8 = _round_up(B, 8)
    x1p = jnp.pad(x1.astype(jnp.float32), ((0, B8 - B), (0, Cp - C)))

    TB = min(_round_up(tb, 8), B8)
    grid = (pl.cdiv(B8, TB),)

    out = pl.pallas_call(
        projector_kernel,
        out_shape=jax.ShapeDtypeStruct((B8, Cp), out_dtype),
        grid=grid,
        in_specs=[
            pl.BlockSpec((TB, Cp), lambda i: (i, 0)),   # activation rows, pipelined over B
            pl.BlockSpec((Cp, H), lambda i: (0, 0)),    # fc1 weight (resident)
            pl.BlockSpec((1, H), lambda i: (0, 0)),     # fc1 bias
            pl.BlockSpec((H, Cp), lambda i: (0, 0)),    # fc2 weight (resident)
            pl.BlockSpec((1, Cp), lambda i: (0, 0)),    # fc2 bias
        ],
        out_specs=pl.BlockSpec((TB, Cp), lambda i: (i, 0)),
        compiler_params=pltpu.CompilerParams(
            dimension_semantics=("parallel",)),          # megacore-shardable on v7x
    )(x1p, params["w1"], params["b1"], params["w2"], params["b2"])

    return out[:B, :C]


def projector_ref(x, w1, b1, w2, b2):
    x1 = jnp.mean(x, axis=-1) if x.ndim == 3 else x
    h = jax.nn.relu(x1 @ w1 + b1)
    return jax.nn.relu(h @ w2 + b2) + x1


if __name__ == "__main__":
    # batch, in_channels, length; hidden=256 is fixed by the module (fc1: C->256).
    B, C, L, H = 16, 32, 16, 256

    key = jax.random.PRNGKey(0)
    kx, kz, k1, k2, k3, k4 = jax.random.split(key, 6)

    x3d = jax.random.normal(kx, (B, C, L), dtype=jnp.float32)
    x2d = jax.random.normal(kz, (B, C), dtype=jnp.float32)
    # Parameters stored transposed as (in, out) for direct matmul in the kernel.
    w1 = jax.random.normal(k1, (C, H), dtype=jnp.float32) * 0.05
    b1 = jax.random.normal(k2, (H,), dtype=jnp.float32) * 0.05
    w2 = jax.random.normal(k3, (H, C), dtype=jnp.float32) * 0.05
    b2 = jax.random.normal(k4, (C,), dtype=jnp.float32) * 0.05

    # Hoisted once (parameter-load time), reused across forward calls.
    params = prepare_projector_params(w1, b1, w2, b2, compute_dtype=jnp.bfloat16)

    out3 = jax.block_until_ready(projector_forward(x3d, params))
    out2 = jax.block_until_ready(projector_forward(x2d, params))

    ref3 = projector_ref(x3d, w1, b1, w2, b2)
    ref2 = projector_ref(x2d, w1, b1, w2, b2)

    assert out3.shape == (B, C) and out2.shape == (B, C)
    # bf16 matmul operands (f32 accumulation / residual) -> relaxed tolerance.
    assert jnp.allclose(out3, ref3, atol=1e-2, rtol=1e-2)
    assert jnp.allclose(out2, ref2, atol=1e-2, rtol=1e-2)

    print("KERNEL_OK")
</pallas_src>

<mosaic_0001>
module attributes {stable_mosaic.version = 11 : i64} {
  func.func @projector_kernel(%arg0: i32, %arg1: memref<16x128xf32, #tpu.memory_space<vmem>>, %arg2: memref<128x256xbf16, #tpu.memory_space<vmem>>, %arg3: memref<1x256xf32, #tpu.memory_space<vmem>>, %arg4: memref<256x128xbf16, #tpu.memory_space<vmem>>, %arg5: memref<1x128xf32, #tpu.memory_space<vmem>>, %arg6: memref<16x128xf32, #tpu.memory_space<vmem>>) attributes {dimension_semantics = [#tpu.dimension_semantics<parallel>], iteration_bounds = array<i64: 1>, scalar_prefetch = 0 : i64, scratch_operands = 0 : i64, tpu.core_type = #tpu.core_type<tc>, window_params = [{transform_indices = @transform_0, window_bounds = array<i64: 16, 128>}, {pipeline_mode = #tpu.pipeline_mode<synchronous>, transform_indices = @transform_1, window_bounds = array<i64: 128, 256>}, {pipeline_mode = #tpu.pipeline_mode<synchronous>, transform_indices = @transform_2, window_bounds = array<i64: 1, 256>}, {pipeline_mode = #tpu.pipeline_mode<synchronous>, transform_indices = @transform_3, window_bounds = array<i64: 256, 128>}, {pipeline_mode = #tpu.pipeline_mode<synchronous>, transform_indices = @transform_4, window_bounds = array<i64: 1, 128>}, {transform_indices = @transform_5, window_bounds = array<i64: 16, 128>}]} {
    %c0 = arith.constant 0 : index
    %c0_0 = arith.constant 0 : index
    %0 = vector.load %arg1[%c0, %c0_0] : memref<16x128xf32, #tpu.memory_space<vmem>>, vector<16x128xf32>
    %1 = arith.truncf %0 : vector<16x128xf32> to vector<16x128xbf16>
    %c0_1 = arith.constant 0 : index
    %c0_2 = arith.constant 0 : index
    %2 = vector.load %arg2[%c0_1, %c0_2] : memref<128x256xbf16, #tpu.memory_space<vmem>>, vector<128x256xbf16>
    %cst = arith.constant dense<0.000000e+00> : vector<16x256xf32>
    %3 = tpu.matmul %1, %2, %cst {dimension_numbers = #tpu.dot_dimension_numbers<[1], [0], [0], [1], [0, 0, 1, 1], [], []>} : vector<16x128xbf16>, vector<128x256xbf16>, vector<16x256xf32> -> vector<16x256xf32>
    %c0_3 = arith.constant 0 : index
    %c0_4 = arith.constant 0 : index
    %4 = vector.load %arg3[%c0_3, %c0_4] : memref<1x256xf32, #tpu.memory_space<vmem>>, vector<1x256xf32>
    %5 = vector.broadcast %4 : vector<1x256xf32> to vector<16x256xf32>
    %6 = arith.addf %3, %5 : vector<16x256xf32>
    %cst_5 = arith.constant 0.000000e+00 : f32
    %7 = vector.broadcast %cst_5 : f32 to vector<16x256xf32>
    %8 = arith.maximumf %6, %7 : vector<16x256xf32>
    %9 = arith.truncf %8 : vector<16x256xf32> to vector<16x256xbf16>
    %c0_6 = arith.constant 0 : index
    %c0_7 = arith.constant 0 : index
    %10 = vector.load %arg4[%c0_6, %c0_7] : memref<256x128xbf16, #tpu.memory_space<vmem>>, vector<256x128xbf16>
    %cst_8 = arith.constant dense<0.000000e+00> : vector<16x128xf32>
    %11 = tpu.matmul %9, %10, %cst_8 {dimension_numbers = #tpu.dot_dimension_numbers<[1], [0], [0], [1], [0, 0, 1, 1], [], []>} : vector<16x256xbf16>, vector<256x128xbf16>, vector<16x128xf32> -> vector<16x128xf32>
    %c0_9 = arith.constant 0 : index
    %c0_10 = arith.constant 0 : index
    %12 = vector.load %arg5[%c0_9, %c0_10] : memref<1x128xf32, #tpu.memory_space<vmem>>, vector<1x128xf32>
    %13 = vector.broadcast %12 : vector<1x128xf32> to vector<16x128xf32>
    %14 = arith.addf %11, %13 : vector<16x128xf32>
    %cst_11 = arith.constant 0.000000e+00 : f32
    %15 = vector.broadcast %cst_11 : f32 to vector<16x128xf32>
    %16 = arith.maximumf %14, %15 : vector<16x128xf32>
    %17 = arith.addf %16, %0 : vector<16x128xf32>
    %c0_12 = arith.constant 0 : index
    %c0_13 = arith.constant 0 : index
    %18 = vector.load %arg6[%c0_12, %c0_13] : memref<16x128xf32, #tpu.memory_space<vmem>>, vector<16x128xf32>
    tpu.vector_store %arg6[%c0_12, %c0_13], %17 {strides = array<i32>} : memref<16x128xf32, #tpu.memory_space<vmem>>, vector<16x128xf32>,
    return
  }
  func.func @transform_0(%arg0: i32) -> (i32, i32) {
    %c0_i32 = arith.constant 0 : i32
    %c0_i32_0 = arith.constant 0 : i32
    return %arg0, %c0_i32 : i32, i32
  }
  func.func @transform_1(%arg0: i32) -> (i32, i32) {
    %c0_i32 = arith.constant 0 : i32
    %c0_i32_0 = arith.constant 0 : i32
    %c0_i32_1 = arith.constant 0 : i32
    return %c0_i32, %c0_i32_0 : i32, i32
  }
  func.func @transform_2(%arg0: i32) -> (i32, i32) {
    %c0_i32 = arith.constant 0 : i32
    %c0_i32_0 = arith.constant 0 : i32
    %c0_i32_1 = arith.constant 0 : i32
    return %c0_i32, %c0_i32_0 : i32, i32
  }
  func.func @transform_3(%arg0: i32) -> (i32, i32) {
    %c0_i32 = arith.constant 0 : i32
    %c0_i32_0 = arith.constant 0 : i32
    %c0_i32_1 = arith.constant 0 : i32
    return %c0_i32, %c0_i32_0 : i32, i32
  }
  func.func @transform_4(%arg0: i32) -> (i32, i32) {
    %c0_i32 = arith.constant 0 : i32
    %c0_i32_0 = arith.constant 0 : i32
    %c0_i32_1 = arith.constant 0 : i32
    return %c0_i32, %c0_i32_0 : i32, i32
  }
  func.func @transform_5(%arg0: i32) -> (i32, i32) {
    %c0_i32 = arith.constant 0 : i32
    %c0_i32_0 = arith.constant 0 : i32
    return %arg0, %c0_i32 : i32, i32
  }
}

</mosaic_0001>

<bundles_post_ra>
// kernel: tpu_custom_call.1
= control target key start
LH: loop header
LB: loop body
LE: loop exit
PB: predicated region body
PF: predicated region fallthrough
CT: control target
= control target key end

     0   :  { %10 = vsyncpa [#allocation3], 0  ;;  %s772_s0 = inlined_call_operand.hbm [shape: f32[16,128], index: 0, kind: input, shape index: {}]   ;;  %s773_s1 = inlined_call_operand.hbm [shape: bf16[128,256], index: 1, kind: input, shape index: {}]   ;;  %s774_s2 = inlined_call_operand.hbm [shape: f32[1,256], index: 2, kind: input, shape index: {}]   ;;  %s775_s3 = inlined_call_operand.hbm [shape: bf16[256,128], index: 3, kind: input, shape index: {}]   ;;  %s776_s4 = inlined_call_operand.vmem [shape: f32[1,128], index: 4, kind: input, shape index: {}]   ;;  %s777_s5 = inlined_call_operand.hbm [shape: f32[16,128], index: 5, kind: output, shape index: {}]  }
   0x1   :  { %11 = vsyncpa [#allocation6], 0 }
   0x2   :  { %12 = vsyncpa [#allocation9], 0 }
   0x3   :  { %13 = vsyncpa [#allocation4], 0  ;;  %s31_s20 = sshll.u32 %s773_s1, 4  ;;  %s706_s21 = smov [#allocation5]   ;;  %s32_s20 = int_to_ptr.hbm [resolvable:$true] %s31_s20 }
   0x4   :  { %s33_s22 = sshll.u32 %s706_s21, 4  ;;  %s18_s25 = sshll.u32 %s772_s0, 4  ;;  %s34_s22 = int_to_ptr.vmem [resolvable:$true] %s33_s22  ;;  %s19_s25 = int_to_ptr.hbm [resolvable:$true] %s18_s25 }
   0x5   :  { %s707_s26 = smov 128   ;;  %s708_s27 = smov 8  }
   0x6   :  { %39 = dma.hbm_to_vmem [thread:$0]  %s32_s20, 2048, %s34_s22, [#allocation6], %s707_s26, %s707_s26, %s708_s27  }
   0x7   :  { %s709_s28 = smov [#allocation2]   ;;  %s45_s1 = sshll.u32 %s774_s2, 4  ;;  %s46_s1 = int_to_ptr.hbm [resolvable:$true] %s45_s1 }
   0x8   :  { %s20_s29 = sshll.u32 %s709_s28, 4  ;;  %s55_s8 = sshll.u32 %s775_s3, 4  ;;  %s21_s29 = int_to_ptr.vmem [resolvable:$true] %s20_s29  ;;  %s56_s8 = int_to_ptr.hbm [resolvable:$true] %s55_s8 }
   0x9   :  { %26 = dma.hbm_to_vmem [thread:$0]  %s19_s25, 256, %s21_s29, [#allocation3], %s707_s26, %s707_s26, %s708_s27  }
   0xa   :  { %s710_s9 = smov [#allocation7]   ;;  %s711_s11 = smov [#allocation8]  }
   0xb   :  { %s47_s10 = sshll.u32 %s710_s9, 4  ;;  %s57_s12 = sshll.u32 %s711_s11, 4  ;;  %s48_s10 = int_to_ptr.vmem [resolvable:$true] %s47_s10  ;;  %s58_s12 = int_to_ptr.vmem [resolvable:$true] %s57_s12 }
   0xc   :  { %50 = dma.hbm_to_vmem [thread:$0]  %s46_s1, 32, %s48_s10, [#allocation6]  }
   0xd   :  { %s712_s13 = smov 64   ;;  %s713_s2 = smov 4  }
   0xe   :  { %63 = dma.hbm_to_vmem [thread:$0]  %s56_s8, 2048, %s58_s12, [#allocation9], %s712_s13, %s712_s13, %s713_s2  }
   0xf   :  { %698 = dma.done.wait [#allocation3], 256  }
  0x10   :  { %699 = vsyncadd [#allocation3], 4294967040 }
  0x11   :  { %700 = dma.done.wait [#allocation6], 2080  }
  0x12   :  { %701 = vsyncadd [#allocation6], 4294965216 }
  0x13   :  { %702 = dma.done.wait [#allocation9], 2048  }
  0x14   :  { %703 = vsyncadd [#allocation9], 4294965248  ;;  %v466_v0 = vld [vmem:[#allocation5 + $0x70] sm:$0xf]  ;;  %v551_v1 = vld [vmem:[#allocation5 + $0x74] sm:$0xf0] }
  0x15   :  { %v550_v2 = vld [vmem:[#allocation5 + $0x74] sm:$0xf]  ;;  %v467_v3 = vor.u32 %v551_v1, %v466_v0  ;;  %v468_v4 = vld [vmem:[#allocation5 + $0x78] sm:$0xf0]  ;;  %v458_v5 = vld [vmem:[#allocation5 + $0x60] sm:$0xf] }
  0x16   :  { %v549_v6 = vld [vmem:[#allocation5 + $0x64] sm:$0xf0]  ;;  %v471_v7 = vor.u32 %v550_v2, %v468_v4  ;;  %v548_v8 = vld [vmem:[#allocation5 + $0x64] sm:$0xf]  ;;  %v460_v9 = vld [vmem:[#allocation5 + $0x68] sm:$0xf0] }
  0x17   :  { %187 = vmatpush.bf16.msra.mxu0 %v467_v3  ;;  %v459_v10 = vor.u32 %v549_v6, %v458_v5  ;;  %v463_v11 = vor.u32 %v548_v8, %v460_v9  ;;  %v450_v12 = vld [vmem:[#allocation5 + $0x50] sm:$0xf]  ;;  %v547_v13 = vld [vmem:[#allocation5 + $0x54] sm:$0xf0]  ;;  %v546_v14 = vld [vmem:[#allocation5 + $0x54] sm:$0xf] }
  0x18   :  { %201 = vmatpush.bf16.msra.mxu1 %v471_v7  ;;  %v452_v15 = vld [vmem:[#allocation5 + $0x58] sm:$0xf0]  ;;  %v451_v16 = vor.u32 %v547_v13, %v450_v12  ;;  %v442_v18 = vld [vmem:[#allocation5 + $0x40] sm:$0xf]  ;;  %v545_v19 = vld [vmem:[#allocation5 + $0x44] sm:$0xf0] }
  0x19   :  { %v455_v17 = vor.u32 %v546_v14, %v452_v15  ;;  %v544_v20 = vld [vmem:[#allocation5 + $0x44] sm:$0xf]  ;;  %v444_v21 = vld [vmem:[#allocation5 + $0x48] sm:$0xf0]  ;;  %v443_v22 = vor.u32 %v545_v19, %v442_v18  ;;  %v559_v23 = vld [vmem:[#allocation8 + $0x38] sm:$0xff]  ;;  %s714_s15 = smov [#allocation10]  }
  0x1a   :  { %v567_v24 = vld [vmem:[#allocation8 + $0x78] sm:$0xff]  ;;  %v447_v25 = vor.u32 %v544_v20, %v444_v21  ;;  %v434_v26 = vld [vmem:[#allocation5 + $0x30] sm:$0xf]  ;;  %v542_v28 = vld [vmem:[#allocation5 + $0x34] sm:$0xf]  ;;  %353 = vmatpush.bf16.msra.mxu2 %v559_v23  ;;  %s391_s16 = sshll.u32 %s714_s15, 4  ;;  %s392_s16 = int_to_ptr.vmem [resolvable:$true] %s391_s16 }
  0x1b   :  { %188 = vmatpush.bf16.msra.mxu0 %v459_v10  ;;  %v543_v27 = vld [vmem:[#allocation5 + $0x34] sm:$0xf0]  ;;  %v436_v29 = vld [vmem:[#allocation5 + $0x38] sm:$0xf0]  ;;  %367 = vmatpush.bf16.msra.mxu3 %v567_v24  ;;  %v426_v34 = vld [vmem:[#allocation5 + $0x20] sm:$0xf] }
  0x1c   :  { %202 = vmatpush.bf16.msra.mxu1 %v463_v11  ;;  %v558_v30 = vld [vmem:[#allocation8 + $0x30] sm:$0xff]  ;;  %v435_v32 = vor.u32 %v543_v27, %v434_v26  ;;  %v439_v33 = vor.u32 %v542_v28, %v436_v29  ;;  %v541_v35 = vld [vmem:[#allocation5 + $0x24] sm:$0xf0]  ;;  %v540_v36 = vld [vmem:[#allocation5 + $0x24] sm:$0xf]  ;;  %s393_s19 = sshll.u32 %s777_s5, 4  ;;  %s394_s19 = int_to_ptr.hbm [resolvable:$true] %s393_s19 }
  0x1d   :  { %v566_v31 = vld [vmem:[#allocation8 + $0x70] sm:$0xff]  ;;  %v428_v37 = vld [vmem:[#allocation5 + $0x28] sm:$0xf0]  ;;  %v427_v40 = vor.u32 %v541_v35, %v426_v34  ;;  %v420_v45 = vld [vmem:[#allocation5 + $0x18] sm:$0xf0] }
  0x1e   :  { %354 = vmatpush.bf16.msra.mxu2 %v558_v30  ;;  %v557_v38 = vld [vmem:[#allocation8 + $0x28] sm:$0xff]  ;;  %v431_v41 = vor.u32 %v540_v36, %v428_v37  ;;  %v539_v43 = vld [vmem:[#allocation5 + $0x14] sm:$0xf0]  ;;  %v538_v44 = vld [vmem:[#allocation5 + $0x14] sm:$0xf] }
  0x1f   :  { %189 = vmatpush.bf16.msra.mxu0 %v451_v16  ;;  %368 = vmatpush.bf16.msra.mxu3 %v566_v31  ;;  %v565_v39 = vld [vmem:[#allocation8 + $0x68] sm:$0xff]  ;;  %v556_v46 = vld [vmem:[#allocation8 + $0x20] sm:$0xff]  ;;  %v423_v49 = vor.u32 %v538_v44, %v420_v45  ;;  %v83_v56 = vld [vmem:[#allocation2 + $0x8] sm:$0xff] }
  0x20   :  { %203 = vmatpush.bf16.msra.mxu1 %v455_v17  ;;  %v418_v42 = vld [vmem:[#allocation5 + $0x10] sm:$0xf]  ;;  %v564_v47 = vld [vmem:[#allocation8 + $0x60] sm:$0xff]  ;;  %v412_v53 = vld [vmem:[#allocation5 + $0x8] sm:$0xf0] }
  0x21   :  { %v419_v48 = vor.u32 %v539_v43, %v418_v42  ;;  %v410_v50 = vld [vmem:[#allocation5] sm:$0xf]  ;;  %v537_v51 = vld [vmem:[#allocation5 + $0x4] sm:$0xf0]  ;;  %v536_v52 = vld [vmem:[#allocation5 + $0x4] sm:$0xf] }
  0x22   :  { %355 = vmatpush.bf16.msra.mxu2 %v557_v38  ;;  %v411_v54 = vor.u32 %v537_v51, %v410_v50  ;;  %v82_v55 = vld [vmem:[#allocation2] sm:$0xff]  ;;  %v415_v57 = vor.u32 %v536_v52, %v412_v53  ;;  %v555_v59 = vld [vmem:[#allocation8 + $0x18] sm:$0xff]  ;;  %v552_v1 = vld [vmem:[#allocation8] sm:$0xff] }
  0x23   :  { %190 = vmatpush.bf16.msra.mxu0 %v443_v22  ;;  %369 = vmatpush.bf16.msra.mxu3 %v565_v39  ;;  %v84_v58 = vpack.c.bf16 %v83_v56, %v82_v55  ;;  %v563_v60 = vld [vmem:[#allocation8 + $0x58] sm:$0xff]  ;;  %v554_v61 = vld [vmem:[#allocation8 + $0x10] sm:$0xff]  ;;  %v553_v63 = vld [vmem:[#allocation8 + $0x8] sm:$0xff] }
  0x24   :  { %204 = vmatpush.bf16.msra.mxu1 %v447_v25  ;;  %v562_v62 = vld [vmem:[#allocation8 + $0x50] sm:$0xff]  ;;  %v561_v0 = vld [vmem:[#allocation8 + $0x48] sm:$0xff]  ;;  %v560_v2 = vld [vmem:[#allocation8 + $0x40] sm:$0xff] }
  0x25   :  { %v101_v3 = vld [vmem:[#allocation7] sm:$0x3]  ;;  %v577_v20 = vld [vmem:[%s776_s4] ss:$0 sm:$0xff] }
  0x26   :  { %356 = vmatpush.bf16.msra.mxu2 %v556_v46  ;;  %v103_v6 = vperm.slane %v101_v3, 0  ;;  %v104_v7 = vperm.slane %v101_v3, 1 }
  0x27   :  { %191 = vmatpush.bf16.msra.mxu0 %v435_v32  ;;  %370 = vmatpush.bf16.msra.mxu3 %v564_v47 }
  0x28   :  { %205 = vmatpush.bf16.msra.mxu1 %v439_v33 }
  0x2a   :  { %357 = vmatpush.bf16.msra.mxu2 %v555_v59 }
  0x2b   :  { %192 = vmatpush.bf16.msra.mxu0 %v427_v40  ;;  %371 = vmatpush.bf16.msra.mxu3 %v563_v60 }
  0x2c   :  { %206 = vmatpush.bf16.msra.mxu1 %v431_v41 }
  0x2e   :  { %358 = vmatpush.bf16.msra.mxu2 %v554_v61 }
  0x2f   :  { %193 = vmatpush.bf16.msra.mxu0 %v419_v48  ;;  %372 = vmatpush.bf16.msra.mxu3 %v562_v62 }
  0x30   :  { %207 = vmatpush.bf16.msra.mxu1 %v423_v49 }
  0x32   :  { %359 = vmatpush.bf16.msra.mxu2 %v553_v63 }
  0x33   :  { %194 = vmatpush.bf16.msra.mxu0 %v411_v54  ;;  %373 = vmatpush.bf16.msra.mxu3 %v561_v0 }
  0x34   :  { %208 = vmatpush.bf16.msra.mxu1 %v415_v57 }
  0x36   :  { %195 = vmatmul.bf16.vlgmr.msra.gmra.mxu0 %v84_v58  ;;  %360 = vmatpush.bf16.msra.mxu2 %v552_v1 }
  0x37   :  { %209 = vmatmul.bf16.vlgmr.msra.gmra.mxu1 %v84_v58  ;;  %374 = vmatpush.bf16.msra.mxu3 %v560_v2 }
  0xb3   :  { %v196_v4 = vpop.f32.mrf.mxu0 }
  0xb4   :  { %v210_v5 = vpop.f32.mrf.mxu1  ;;  %v197_v8 = vadd.f32 %v196_v4, %v103_v6 }
  0xb5   :  { %v211_v9 = vadd.f32 %v210_v5, %v104_v7 }
  0xb6   :  { %v215_v14 = vmax.f32 %v197_v8, 0.0 }
  0xb7   :  { %v216_v16 = vmax.f32 %v211_v9, 0.0 }
  0xbb   :  { %v198_v10 = vpop.f32.mrf.mxu0 }
  0xbc   :  { %v199_v11 = vadd.f32 %v198_v10, %v103_v6  ;;  %v212_v12 = vpop.f32.mrf.mxu1 }
  0xbd   :  { %v213_v13 = vadd.f32 %v212_v12, %v104_v7 }
  0xbe   :  { %v217_v15 = vmax.f32 %v199_v11, 0.0 }
  0xbf   :  { %v218_v17 = vmax.f32 %v213_v13, 0.0 }
  0xc0   :  { %v219_v18 = vpack.c.bf16 %v217_v15, %v215_v14 }
  0xc1   :  { %v220_v19 = vpack.c.bf16 %v218_v17, %v216_v16 }
  0xc2   :  { %361 = vmatmul.bf16.vlgmr.msra.gmra.mxu2 %v219_v18 }
  0xc3   :  { %375 = vmatmul.bf16.vlgmr.msra.gmra.mxu3 %v220_v19 }
 0x145   :  { %v362_v21 = vpop.f32.mrf.mxu2 }
 0x146   :  { %v363_v22 = vadd.f32 %v577_v20, %v362_v21  ;;  %v376_v23 = vpop.f32.mrf.mxu3 }
 0x148   :  { %v377_v24 = vadd.f32 %v376_v23, %v363_v22 }
 0x14a   :  { %v381_v25 = vmax.f32 %v377_v24, 0.0 }
 0x14c   :  { %v383_v26 = vadd.f32 %v381_v25, %v82_v55 }
 0x14d   :  { %v364_v27 = vpop.f32.mrf.mxu2 }
 0x14e   :  { %385 = vst [vmem:[#allocation10] sm:$0xff] %v383_v26  ;;  %v365_v28 = vadd.f32 %v577_v20, %v364_v27  ;;  %v378_v29 = vpop.f32.mrf.mxu3 }
 0x150   :  { %v379_v30 = vadd.f32 %v378_v29, %v365_v28 }
 0x152   :  { %v382_v31 = vmax.f32 %v379_v30, 0.0 }
 0x154   :  { %v384_v32 = vadd.f32 %v382_v31, %v83_v56 }
 0x156   :  { %386 = vst [vmem:[#allocation10 + $0x8] sm:$0xff] %v384_v32 }
 0x157   :  { %399 = dma.vmem_to_hbm [thread:$0]  %s392_s16, 256, %s394_s19, [#allocation4], %s707_s26, %s707_s26, %s708_s27  }
 0x158   :  { %704 = dma.done.wait [#allocation4], 256  }
 0x159   :  { %705 = vsyncadd [#allocation4], 4294967040 }
 0x15a   :  { %404 = vsyncpa [#allocation3], 1 }
 0x15b   :  { %405 = vsyncpa [#allocation6], 1 }
 0x15c   :  { %406 = vsyncpa [#allocation9], 1 }
 0x15d   :  { %407 = vsyncpa [#allocation4], 1 }

</bundles_post_ra>
